<compile_context>
chip_gen: v6e
topology: v6e:2x2x1
jax: 0.10.0
libtpu: 0.0.40
codegen_flags: <defaults>
</compile_context>

<pallas_src>
import jax
import jax.numpy as jnp
from jax.experimental import pallas as pl
from jax.experimental.pallas import tpu as pltpu


_TARGET_BLOCK_BYTES = 4 * 1024 * 1024     # ~4 MiB per input block (perf-review sweet spot)
_LANE_CHOICES = (1024, 512, 256, 128)
_VMEM_LIMIT_BYTES = 32 * 1024 * 1024      # 2 in x 2 buf x 4 MiB = 16 MiB + generous slack


def _pick_layout(n_elems):
    """Return (padded_elems, rows, lane): widest lane-dense 2-D flattening, prefer rows % 8 == 0."""
    padded = ((n_elems + 127) // 128) * 128
    fallback = None
    for lane in _LANE_CHOICES:
        if padded % lane:
            continue
        rows = padded // lane
        if rows % 8 == 0:
            return padded, rows, lane
        if fallback is None:
            fallback = (padded, rows, lane)
    return fallback          # lane=128 always divides `padded`


def _make_sse_kernel(tile_rows, tiles_per_split, valid_rows, need_mask):
    """Per-lane partial sums of (x - t)^2, accumulated over the inner grid axis."""

    def kernel(x_ref, t_ref, out_ref, acc_ref):
        i = pl.program_id(1)                       # inner "arbitrary" (reduction) axis

        @pl.when(i == 0)
        def _():
            acc_ref[...] = jnp.zeros_like(acc_ref)

        # Subtract in native dtype (bf16 stays bf16); widen to f32 for square + accumulate.
        d = (x_ref[...] - t_ref[...]).astype(jnp.float32)
        sq = d * d

        if need_mask:
            # Zero rows past the true row count (partial / duplicated tail tiles only).
            c = pl.program_id(0)
            logical_block = c * tiles_per_split + i
            row_ids = jax.lax.broadcasted_iota(jnp.int32, sq.shape, 0)
            global_rows = logical_block * tile_rows + row_ids
            sq = jnp.where(global_rows < valid_rows, sq, 0.0)

        # Sublane-only reduce per step; cross-lane reduce deferred to the wrapper.
        acc_ref[...] += jnp.sum(sq, axis=0, keepdims=True)

        @pl.when(i == tiles_per_split - 1)
        def _():
            out_ref[...] = acc_ref[...][None]      # (1, lane) -> (1, 1, lane)

    return kernel


def content_loss_forward(x, target, weight, *, max_block_bytes=_TARGET_BLOCK_BYTES):
    """ContentLoss.forward.

    loss   = MSE(x * weight, target * weight) == weight^2 * mean((x - target)^2)
    output = x (identity passthrough, returned directly — no extra HBM traffic).
    Returns (output, loss).
    """
    assert x.shape == target.shape, (x.shape, target.shape)
    n_elems = int(x.size)
    padded_elems, rows, lane = _pick_layout(n_elems)

    x_flat = x.reshape(-1)
    t_flat = target.reshape(-1)
    if padded_elems != n_elems:
        # Rare fallback (flattened size not a multiple of 128); zero pad adds 0 to the SSE.
        pad = padded_elems - n_elems
        x_flat = jnp.pad(x_flat, (0, pad))
        t_flat = jnp.pad(t_flat, (0, pad))
    x2 = x_flat.reshape(rows, lane)
    t2 = t_flat.reshape(rows, lane)

    # ---- tile sizing: close to max_block_bytes, rows per tile a multiple of 8 ----
    bytes_per_row = lane * max(x.dtype.itemsize, target.dtype.itemsize)
    max_tile_rows = max(8, (max_block_bytes // bytes_per_row) // 8 * 8)
    tile_rows = rows if rows <= max_tile_rows else max_tile_rows

    num_blocks = pl.cdiv(rows, tile_rows)          # real blocks along the row axis
    n_split = 2 if num_blocks >= 2 else 1          # v7x: shard stream across both TensorCores
    tiles_per_split = pl.cdiv(num_blocks, n_split)
    need_mask = n_split * tiles_per_split * tile_rows > rows

    def in_index_map(c, i):
        # Clamp so a duplicated tail block (odd block count) never indexes out of range;
        # the in-kernel row mask zeroes its contribution.
        return (jnp.minimum(c * tiles_per_split + i, num_blocks - 1), 0)

    kernel = _make_sse_kernel(tile_rows, tiles_per_split, rows, need_mask)

    bytes_per_elem = x.dtype.itemsize + target.dtype.itemsize
    partials = pl.pallas_call(
        kernel,
        grid=(n_split, tiles_per_split),
        in_specs=[
            pl.BlockSpec((tile_rows, lane), in_index_map),
            pl.BlockSpec((tile_rows, lane), in_index_map),
        ],
        out_specs=pl.BlockSpec((1, 1, lane), lambda c, i: (c, 0, 0)),
        out_shape=jax.ShapeDtypeStruct((n_split, 1, lane), jnp.float32),
        scratch_shapes=[pltpu.VMEM((1, lane), jnp.float32)],
        compiler_params=pltpu.CompilerParams(
            dimension_semantics=("parallel", "arbitrary"),
            vmem_limit_bytes=_VMEM_LIMIT_BYTES,
        ),
        cost_estimate=pl.CostEstimate(
            flops=3 * n_elems,
            transcendentals=0,
            bytes_accessed=n_elems * bytes_per_elem + n_split * lane * 4,
        ),
    )(x2, t2)

    w = jnp.asarray(weight, dtype=jnp.float32)     # works for Python floats and traced scalars
    loss = jnp.sum(partials) * (w * w) / jnp.float32(n_elems)
    return x, loss


if __name__ == "__main__":
    key = jax.random.PRNGKey(0)
    k_in, k_tgt, k_in2, k_tgt2 = jax.random.split(key, 4)

    # Small NCHW feature map, like a VGG conv activation.
    N, C, H, W = 2, 4, 16, 16
    x = jax.random.normal(k_in, (N, C, H, W), dtype=jnp.float32)
    target = jax.random.normal(k_tgt, (N, C, H, W), dtype=jnp.float32)
    weight = 1000.0                     # content-weight hyperparameter
    target_scaled = target * weight     # mirrors __init__: target.detach() * weight

    output, loss = content_loss_forward(x, target, weight)
    jax.block_until_ready((output, loss))

    ref_loss = jnp.mean((x * weight - target_scaled) ** 2)
    assert jnp.allclose(output, x), "passthrough output mismatch"
    assert jnp.allclose(loss, ref_loss, rtol=1e-4, atol=1e-2), (loss, ref_loss)

    # Second check: exercises the multi-tile / tail-mask / two-TensorCore-split reduction
    # path by forcing a tiny block size at a small shape.
    x_b = jax.random.normal(k_in2, (2, 3, 40, 128), dtype=jnp.float32)
    t_b = jax.random.normal(k_tgt2, (2, 3, 40, 128), dtype=jnp.float32)
    w_b = 0.5
    out_b, loss_b = content_loss_forward(x_b, t_b, w_b, max_block_bytes=8 * 256 * 4)
    jax.block_until_ready((out_b, loss_b))
    ref_b = jnp.mean((x_b * w_b - t_b * w_b) ** 2)
    assert jnp.allclose(out_b, x_b), "passthrough output mismatch (tiled path)"
    assert jnp.allclose(loss_b, ref_b, rtol=1e-4, atol=1e-5), (loss_b, ref_b)

    # TODO(synk): ContentLoss.backward (loss.backward / retained autograd graph) has no
    # forward-kernel equivalent; gradients would come from jax.grad over this forward.
    print("KERNEL_OK")
</pallas_src>

<mosaic_0001>
module attributes {stable_mosaic.version = 11 : i64} {
  func.func @kernel(%arg0: i32, %arg1: i32, %arg2: memref<8x256xf32, #tpu.memory_space<vmem>>, %arg3: memref<8x256xf32, #tpu.memory_space<vmem>>, %arg4: memref<1x1x256xf32, #tpu.memory_space<vmem>>, %arg5: memref<1x256xf32, #tpu.memory_space<vmem>>) attributes {dimension_semantics = [#tpu.dimension_semantics<parallel>, #tpu.dimension_semantics<arbitrary>], iteration_bounds = array<i64: 1, 1>, scalar_prefetch = 0 : i64, scratch_operands = 1 : i64, tpu.core_type = #tpu.core_type<tc>, window_params = [{transform_indices = @transform_0, window_bounds = array<i64: 8, 256>}, {transform_indices = @transform_1, window_bounds = array<i64: 8, 256>}, {transform_indices = @transform_2, window_bounds = array<i64: 1, 1, 256>}]} {
    %c0_i32 = arith.constant 0 : i32
    %0 = arith.cmpi eq, %arg1, %c0_i32 : i32
    %1 = arith.extui %0 : i1 to i32
    %c0_i32_0 = arith.constant 0 : i32
    %2 = arith.cmpi ne, %1, %c0_i32_0 : i32
    scf.if %2 {
      %cst_10 = arith.constant 0.000000e+00 : f32
      %15 = vector.broadcast %cst_10 : f32 to vector<1x256xf32>
      %c0_11 = arith.constant 0 : index
      %c0_12 = arith.constant 0 : index
      %16 = vector.load %arg5[%c0_11, %c0_12] : memref<1x256xf32, #tpu.memory_space<vmem>>, vector<1x256xf32>
      tpu.vector_store %arg5[%c0_11, %c0_12], %15 {strides = array<i32>} : memref<1x256xf32, #tpu.memory_space<vmem>>, vector<1x256xf32>,
    } else {
    }
    %c0 = arith.constant 0 : index
    %c0_1 = arith.constant 0 : index
    %3 = vector.load %arg2[%c0, %c0_1] : memref<8x256xf32, #tpu.memory_space<vmem>>, vector<8x256xf32>
    %c0_2 = arith.constant 0 : index
    %c0_3 = arith.constant 0 : index
    %4 = vector.load %arg3[%c0_2, %c0_3] : memref<8x256xf32, #tpu.memory_space<vmem>>, vector<8x256xf32>
    %5 = arith.subf %3, %4 : vector<8x256xf32>
    %6 = arith.mulf %5, %5 : vector<8x256xf32>
    %c0_4 = arith.constant 0 : index
    %c0_5 = arith.constant 0 : index
    %7 = vector.load %arg5[%c0_4, %c0_5] : memref<1x256xf32, #tpu.memory_space<vmem>>, vector<1x256xf32>
    %cst = arith.constant dense<0.000000e+00> : vector<256xf32>
    %8 = vector.multi_reduction <add>, %6, %cst [0] : vector<8x256xf32> to vector<256xf32>
    %9 = vector.shape_cast %8 : vector<256xf32> to vector<1x256xf32>
    %10 = arith.addf %7, %9 : vector<1x256xf32>
    %c0_6 = arith.constant 0 : index
    %c0_7 = arith.constant 0 : index
    %11 = vector.load %arg5[%c0_6, %c0_7] : memref<1x256xf32, #tpu.memory_space<vmem>>, vector<1x256xf32>
    tpu.vector_store %arg5[%c0_6, %c0_7], %10 {strides = array<i32>} : memref<1x256xf32, #tpu.memory_space<vmem>>, vector<1x256xf32>,
    %c0_i32_8 = arith.constant 0 : i32
    %12 = arith.cmpi eq, %arg1, %c0_i32_8 : i32
    %13 = arith.extui %12 : i1 to i32
    %c0_i32_9 = arith.constant 0 : i32
    %14 = arith.cmpi ne, %13, %c0_i32_9 : i32
    scf.if %14 {
      %c0_10 = arith.constant 0 : index
      %c0_11 = arith.constant 0 : index
      %15 = vector.load %arg5[%c0_10, %c0_11] : memref<1x256xf32, #tpu.memory_space<vmem>>, vector<1x256xf32>
      %16 = vector.shape_cast %15 : vector<1x256xf32> to vector<1x1x256xf32>
      %c0_12 = arith.constant 0 : index
      %c0_13 = arith.constant 0 : index
      %c0_14 = arith.constant 0 : index
      %17 = vector.load %arg4[%c0_12, %c0_13, %c0_14] : memref<1x1x256xf32, #tpu.memory_space<vmem>>, vector<1x1x256xf32>
      tpu.vector_store %arg4[%c0_12, %c0_13, %c0_14], %16 {strides = array<i32>} : memref<1x1x256xf32, #tpu.memory_space<vmem>>, vector<1x1x256xf32>,
    } else {
    }
    return
  }
  func.func @transform_0(%arg0: i32, %arg1: i32) -> (i32, i32) {
    %c1_i32 = arith.constant 1 : i32
    %0 = arith.muli %arg0, %c1_i32 : i32
    %1 = arith.addi %0, %arg1 : i32
    %c0_i32 = arith.constant 0 : i32
    %2 = arith.minsi %1, %c0_i32 : i32
    %c0_i32_0 = arith.constant 0 : i32
    %c0_i32_1 = arith.constant 0 : i32
    return %2, %c0_i32_0 : i32, i32
  }
  func.func @transform_1(%arg0: i32, %arg1: i32) -> (i32, i32) {
    %c1_i32 = arith.constant 1 : i32
    %0 = arith.muli %arg0, %c1_i32 : i32
    %1 = arith.addi %0, %arg1 : i32
    %c0_i32 = arith.constant 0 : i32
    %2 = arith.minsi %1, %c0_i32 : i32
    %c0_i32_0 = arith.constant 0 : i32
    %c0_i32_1 = arith.constant 0 : i32
    return %2, %c0_i32_0 : i32, i32
  }
  func.func @transform_2(%arg0: i32, %arg1: i32) -> (i32, i32, i32) {
    %c0_i32 = arith.constant 0 : i32
    %c0_i32_0 = arith.constant 0 : i32
    %c0_i32_1 = arith.constant 0 : i32
    return %arg0, %c0_i32, %c0_i32_0 : i32, i32, i32
  }
}

</mosaic_0001>

<bundles_post_ra>
// kernel: tpu_custom_call.1
= control target key start
LH: loop header
LB: loop body
LE: loop exit
PB: predicated region body
PF: predicated region fallthrough
CT: control target
= control target key end

     0   :  { %7 = vsyncpa [#allocation4], 0  ;;  %s243_s0 = inlined_call_operand.hbm [shape: f32[8,256], index: 0, kind: input, shape index: {}]   ;;  %s244_s1 = inlined_call_operand.hbm [shape: f32[8,256], index: 1, kind: input, shape index: {}]   ;;  %s245_s2 = inlined_call_operand.hbm [shape: f32[1,1,256], index: 2, kind: output, shape index: {}]  }
   0x1   :  { %8 = vsyncpa [#allocation7], 0 }
   0x2   :  { %9 = vsyncpa [#allocation5], 0  ;;  %s204_s9 = smov [#allocation3]   ;;  %s205_s11 = smov [#allocation6]  }
   0x3   :  { %s22_s10 = sshll.u32 %s204_s9, 4  ;;  %s38_s12 = sshll.u32 %s205_s11, 4  ;;  %s23_s10 = int_to_ptr.vmem [resolvable:$true] %s22_s10  ;;  %s39_s12 = int_to_ptr.vmem [resolvable:$true] %s38_s12 }
   0x4   :  { %s146_s13 = scalar_lea.vmem %s23_s10, 256  ;;  %p151_p1 = scmp.lt.s32.totalorder %s23_s10, %s23_s10 }
   0x5   :  { %p147_p0 = scmp.ne.s32.totalorder %s23_s10, %s146_s13  ;;  %p152_p2 = scmp.lt.s32.totalorder %s146_s13, %s146_s13 }
   0x7   :  { %p153_p3 = por %p152_p2, %p151_p1 }
   0x9   :  { %p154_p4 = pnand %p153_p3, %p147_p0 }
   0xb   :  { %157 = shalt.err (!%p154_p4)
}
   0xc   :  { %25 = dma.hbm_to_vmem [thread:$0]  %s243_s0, 256, %s23_s10, [#allocation4]  }
   0xd   :  { %s166_s16 = scalar_lea.vmem %s39_s12, 256  ;;  %p171_p6 = scmp.lt.s32.totalorder %s39_s12, %s39_s12 }
   0xe   :  { %p167_p5 = scmp.ne.s32.totalorder %s39_s12, %s166_s16  ;;  %p172_p7 = scmp.lt.s32.totalorder %s166_s16, %s166_s16 }
  0x10   :  { %p173_p8 = por %p172_p7, %p171_p6 }
  0x12   :  { %p174_p9 = pnand %p173_p8, %p167_p5 }
  0x14   :  { %177 = shalt.err (!%p174_p9)
}
  0x15   :  { %41 = dma.hbm_to_vmem [thread:$0]  %s244_s1, 256, %s39_s12, [#allocation7]  }
  0x16   :  { %198 = dma.done.wait [#allocation4], 256  }
  0x17   :  { %199 = vsyncadd [#allocation4], 4294967040 }
  0x18   :  { %200 = dma.done.wait [#allocation7], 256  }
  0x19   :  { %201 = vsyncadd [#allocation7], 4294967040  ;;  %v58_v0 = vlaneseq  ;;  %v206_v2 = vmov 0.0   ;;  %v63_v3 = vld [vmem:[#allocation3] sm:$0xff]  ;;  %v64_v4 = vld [vmem:[#allocation3 + $0x8] sm:$0xff]  ;;  %s208_s0 = smov [#allocation8]  }
  0x1a   :  { %v65_v5 = vld [vmem:[#allocation6] sm:$0xff]  ;;  %v66_v6 = vld [vmem:[#allocation6 + $0x8] sm:$0xff]  ;;  %v207_v15 = vmov 1966171168   ;;  %s119_s1 = sshll.u32 %s208_s0, 4  ;;  %s120_s1 = int_to_ptr.vmem [resolvable:$true] %s119_s1 }
  0x1b   :  { %vm230_vm0 = vcmp.lt.s32.totalorder %v58_v0, 256  ;;  %v67_v7 = vsub.f32 %v63_v3, %v65_v5  ;;  %v68_v8 = vsub.f32 %v64_v4, %v66_v6  ;;  %v88_v16 = vunpack.c.l.s4 %v207_v15  ;;  %s178_s19 = scalar_lea.vmem %s120_s1, 32  ;;  %p183_p11 = scmp.lt.s32.totalorder %s120_s1, %s120_s1 }
  0x1c   :  { %62 = vst.msk [vmem:[#allocation2] sm:$0x3] %vm230_vm0, %v206_v2  ;;  %v91_v22 = vshrl.u32 %v58_v0, 7  ;;  %p179_p10 = scmp.ne.s32.totalorder %s120_s1, %s178_s19  ;;  %p184_p12 = scmp.lt.s32.totalorder %s178_s19, %s178_s19 }
  0x1d   :  { %v69_v9 = vmul.f32 %v67_v7, %v67_v7  ;;  %v70_v10 = vmul.f32 %v68_v8, %v68_v8  ;;  %v89_v21 = vunpack.c.0.s8 %v88_v16 }
  0x1e   :  { %p185_p13 = por %p184_p12, %p183_p11 }
  0x1f   :  { %v72_v11 = vrot.slane %v69_v9, 4  ;;  %v78_v12 = vrot.slane %v70_v10, 4  ;;  %v92_v27 = vsub.s32 %v89_v21, %v91_v22 }
  0x20   :  { %p186_p0 = pnand %p185_p13, %p179_p10 }
  0x21   :  { %v73_v13 = vadd.f32 %v72_v11, %v69_v9  ;;  %v79_v14 = vadd.f32 %v78_v12, %v70_v10 }
  0x23   :  { %v74_v17 = vrot.slane %v73_v13, 2  ;;  %v80_v18 = vrot.slane %v79_v14, 2  ;;  %v71_v30 = vld [vmem:[#allocation2] sm:$0x3] }
  0x25   :  { %v75_v19 = vadd.f32 %v74_v17, %v73_v13  ;;  %v81_v20 = vadd.f32 %v80_v18, %v79_v14 }
  0x27   :  { %v76_v23 = vrot.slane %v75_v19, 1  ;;  %v82_v24 = vrot.slane %v81_v20, 1 }
  0x29   :  { %v77_v25 = vadd.f32 %v76_v23, %v75_v19  ;;  %v83_v26 = vadd.f32 %v82_v24, %v81_v20 }
  0x2b   :  { %v86_v28 = vcombine.low %v77_v25, %v83_v26 }
  0x2d   :  { %v93_v29 = vrot.slane %v86_v28, %v92_v27 }
  0x2f   :  { %v100_v31 = vrot.slane %v93_v29, %v92_v27 }
  0x31   :  { %v102_v32 = vadd.f32 %v100_v31, %v71_v30 }
  0x33   :  { %107 = vst.msk [vmem:[#allocation2] sm:$0x3] %vm230_vm0, %v102_v32 }
  0x3a   :  { %v111_v33 = vld [vmem:[#allocation2] sm:$0x3] }
  0x3b   :  { %112 = vst.msk [vmem:[#allocation8] sm:$0x3] %vm230_vm0, %v111_v33 }
  0x3c   :  { %189 = shalt.err (!%p186_p0)
}
  0x3d   :  { %122 = dma.vmem_to_hbm [thread:$0]  %s120_s1, 32, %s245_s2, [#allocation5]  }
  0x3e   :  { %202 = dma.done.wait [#allocation5], 32  }
  0x3f   :  { %203 = vsyncadd [#allocation5], 4294967264 }
  0x40   :  { %126 = vsyncpa [#allocation4], 1 }
  0x41   :  { %127 = vsyncpa [#allocation7], 1 }
  0x42   :  { %128 = vsyncpa [#allocation5], 1 }

</bundles_post_ra>
